<compile_context>
chip_gen: v5e
topology: v5e:2x2
jax: 0.10.0
libtpu: 0.0.40
codegen_flags: <defaults>
</compile_context>

<pallas_src>
import functools

import jax
import jax.numpy as jnp
from jax.experimental import pallas as pl
from jax.experimental.pallas import tpu as pltpu

HIDDEN = 64          # logical hidden size (matches the PyTorch module)
HIDDEN_PAD = 128     # lane-dense padded hidden size used inside the kernel


def _round_up(n, m):
    return ((n + m - 1) // m) * m


# --------------------------------------------------------------------------- #
# Kernel
# --------------------------------------------------------------------------- #
def _qnet_kernel(x_ref, w1_ref, b1_ref, w2_ref, b2_ref, w3_ref, b3_ref, out_ref):
    mxu_dtype = w2_ref.dtype  # bf16 (default) or f32

    # ---- fc1 + ReLU.  K == state_size is tiny (e.g. 8): an MXU pass would be
    # ~6% utilized, so compute it as an unrolled VPU broadcast-FMA in f32
    # (static Python unroll over the state features), keeping vex/MXU slots free.
    x = x_ref[...].astype(jnp.float32)                 # (tm, S)
    w1 = w1_ref[...].astype(jnp.float32)               # (S, Hp)
    acc = x[:, 0:1] * w1[0:1, :]
    for k in range(1, x.shape[1]):                     # static unroll
        acc = acc + x[:, k:k + 1] * w1[k:k + 1, :]
    h1 = jnp.maximum(acc + b1_ref[...], 0.0)           # (tm, Hp) f32

    # ---- fc2 + ReLU on the MXU (f32 accumulate); bias/ReLU on the VPU in f32.
    h2 = jnp.dot(h1.astype(mxu_dtype), w2_ref[...],
                 preferred_element_type=jnp.float32)
    h2 = jnp.maximum(h2 + b2_ref[...], 0.0)

    # ---- fc3 (no activation).  Narrow N=action_size output stays on the MXU.
    out = jnp.dot(h2.astype(mxu_dtype), w3_ref[...],
                  preferred_element_type=jnp.float32)
    out_ref[...] = (out + b3_ref[...]).astype(out_ref.dtype)


# --------------------------------------------------------------------------- #
# Tile / VMEM planning
# --------------------------------------------------------------------------- #
def _vmem_capacity_bytes():
    try:
        return int(pltpu.get_tpu_info().vmem_capacity_bytes)
    except Exception:
        return 64 << 20  # conservative fallback (v7x per-TensorCore VMEM)


def _plan(batch, block_m, x_itemsize):
    """Pick the batch tile tm and a matching vmem_limit_bytes."""
    vmem_cap = _vmem_capacity_bytes()
    # Per-row VMEM footprint estimate (last dim lane-padded to 128):
    bytes_per_row = (2 * 128 * x_itemsize      # x block, double-buffered
                     + 2 * 128 * 4             # out block (f32), double-buffered
                     + 4 * HIDDEN_PAD * 4      # f32 intermediates / accumulators
                     + 2 * HIDDEN_PAD * 2)     # bf16 copies fed to the MXU
    tm_cap = max(256, (int(0.6 * vmem_cap) // bytes_per_row // 256) * 256)

    sub = 16 if x_itemsize == 2 else 8         # sublane granularity (bf16 packs 2)
    block_m = max(sub, (block_m // sub) * sub)

    if batch <= min(block_m, 512):
        # Single block covering the whole batch: block_shape == array dims, so it
        # is exempt from the (8, 128) divisibility rule.  Overhead-bound anyway.
        tm = batch
    elif batch <= 2 * min(block_m, tm_cap):
        # Ensure >= 2 grid steps so both TensorCores get work on v7x
        # (one extra ~0.35us step on 1-TC chips is negligible at this size).
        align = max(sub, 256) if batch > 512 else sub
        tm = min(_round_up(pl.cdiv(batch, 2), align), block_m, tm_cap)
    else:
        tm = min(block_m, tm_cap)

    vmem_need = tm * bytes_per_row + (2 << 20)   # + weights/biases + slack
    vmem_limit = int(max(32 << 20, min(vmem_need, int(0.9 * vmem_cap))))
    return tm, vmem_limit


# --------------------------------------------------------------------------- #
# Host-side wrapper
# --------------------------------------------------------------------------- #
def prepare_qnetwork_params(params, *, hidden_pad=HIDDEN_PAD, mxu_dtype=jnp.bfloat16):
    """Zero-pad the hidden dim to `hidden_pad` lanes and cast weights for the MXU.

    Padding is mathematically a no-op: padded w1 columns / b1 entries are zero,
    so the extra hidden activations are ReLU(0)=0 and the padded w2/w3 rows
    multiply them by zero.  Biases stay f32 (post-accumulation path).
    """
    w1, b1, w2, b2, w3, b3 = (params["w1"], params["b1"], params["w2"],
                              params["b2"], params["w3"], params["b3"])
    hidden = w1.shape[1]
    pad = hidden_pad - hidden
    if pad > 0:
        w1 = jnp.pad(w1, ((0, 0), (0, pad)))
        b1 = jnp.pad(b1, ((0, 0), (0, pad)))
        w2 = jnp.pad(w2, ((0, pad), (0, pad)))
        b2 = jnp.pad(b2, ((0, 0), (0, pad)))
        w3 = jnp.pad(w3, ((0, pad), (0, 0)))
    w1, w2, w3 = (w.astype(mxu_dtype) for w in (w1, w2, w3))
    b1, b2, b3 = (b.astype(jnp.float32) for b in (b1, b2, b3))
    return dict(w1=w1, b1=b1, w2=w2, b2=b2, w3=w3, b3=b3)


@functools.partial(jax.jit, static_argnames=("block_m",))
def qnetwork_forward(x, prepared, *, block_m=8192):
    """x: [batch, state_size] float32. prepared: output of prepare_qnetwork_params."""
    w1, b1, w2, b2, w3, b3 = (prepared["w1"], prepared["b1"], prepared["w2"],
                              prepared["b2"], prepared["w3"], prepared["b3"])
    batch, state_size = x.shape
    action_size = w3.shape[1]
    hidden_pad = w2.shape[1]

    # Cast x on the wrapper side when the MXU path is bf16: halves the dominant
    # HBM stream and the x VMEM footprint (the kernel re-widens to f32 for fc1).
    if w1.dtype == jnp.bfloat16:
        x = x.astype(jnp.bfloat16)

    tm, vmem_limit = _plan(batch, block_m, x.dtype.itemsize)
    grid = (pl.cdiv(batch, tm),)

    # Weights/biases: full-array blocks, constant index_map -> VMEM-resident.
    def const_spec(shape):
        return pl.BlockSpec(shape, lambda i: (0, 0))

    in_specs = [
        pl.BlockSpec((tm, state_size), lambda i: (i, 0)),   # x: batch-tiled
        const_spec(w1.shape), const_spec(b1.shape),
        const_spec(w2.shape), const_spec(b2.shape),
        const_spec(w3.shape), const_spec(b3.shape),
    ]
    # Keep the output un-padded: block last dim == full array last dim, so the
    # HBM writeback stays 4*action_size B/row instead of 512 B/row.
    out_specs = pl.BlockSpec((tm, action_size), lambda i: (i, 0))

    flops = 2 * batch * (state_size * hidden_pad
                         + hidden_pad * hidden_pad
                         + hidden_pad * action_size)
    bytes_accessed = (x.size * x.dtype.itemsize
                      + batch * action_size * 4
                      + sum(a.size * a.dtype.itemsize
                            for a in (w1, b1, w2, b2, w3, b3)))

    return pl.pallas_call(
        _qnet_kernel,
        out_shape=jax.ShapeDtypeStruct((batch, action_size), jnp.float32),
        grid=grid,
        in_specs=in_specs,
        out_specs=out_specs,
        compiler_params=pltpu.CompilerParams(
            dimension_semantics=("parallel",),
            vmem_limit_bytes=vmem_limit),
        cost_estimate=pl.CostEstimate(flops=flops, transcendentals=0,
                                      bytes_accessed=bytes_accessed),
    )(x, w1, b1, w2, b2, w3, b3)


# --------------------------------------------------------------------------- #
# Init / reference
# --------------------------------------------------------------------------- #
def init_qnetwork_params(key, state_size, action_size, hidden=HIDDEN):
    """Deterministic init mimicking nn.Linear's U(-1/sqrt(fan_in), 1/sqrt(fan_in))."""
    ks = jax.random.split(key, 6)

    def linear(kw, kb, fan_in, fan_out):
        bound = 1.0 / jnp.sqrt(jnp.float32(fan_in))
        w = jax.random.uniform(kw, (fan_in, fan_out), jnp.float32, -bound, bound)
        b = jax.random.uniform(kb, (1, fan_out), jnp.float32, -bound, bound)
        return w, b

    w1, b1 = linear(ks[0], ks[1], state_size, hidden)
    w2, b2 = linear(ks[2], ks[3], hidden, hidden)
    w3, b3 = linear(ks[4], ks[5], hidden, action_size)
    return dict(w1=w1, b1=b1, w2=w2, b2=b2, w3=w3, b3=b3)


def qnetwork_reference(x, p):
    """Pure-JAX reference matching the PyTorch forward (unpadded f32 params)."""
    h = jnp.maximum(x @ p["w1"] + p["b1"], 0.0)
    h = jnp.maximum(h @ p["w2"] + p["b2"], 0.0)
    return h @ p["w3"] + p["b3"]


if __name__ == "__main__":
    key = jax.random.PRNGKey(0)
    k_param, k_x1, k_x2, k_x3 = jax.random.split(key, 4)

    state_size, action_size = 8, 4
    params = init_qnetwork_params(k_param, state_size, action_size)
    prepared_bf16 = prepare_qnetwork_params(params, mxu_dtype=jnp.bfloat16)
    prepared_f32 = prepare_qnetwork_params(params, mxu_dtype=jnp.float32)

    # --- Test 1: default bf16 MXU path, single full-array block (batch=8) ---
    x1 = jax.random.normal(k_x1, (8, state_size), jnp.float32)
    out1 = jax.block_until_ready(qnetwork_forward(x1, prepared_bf16))
    ref1 = qnetwork_reference(x1, params)
    assert out1.shape == (8, action_size)
    # bf16 weights + bf16 x is an intentional precision tradeoff vs f32 ref.
    assert jnp.allclose(out1, ref1, atol=1e-1, rtol=5e-2), "bf16 path mismatch"

    # --- Test 2: f32 MXU path, multi-step grid with a partial last block ---
    x2 = jax.random.normal(k_x2, (20, state_size), jnp.float32)
    out2 = jax.block_until_ready(qnetwork_forward(x2, prepared_f32, block_m=8))
    ref2 = qnetwork_reference(x2, params)
    assert out2.shape == (20, action_size)
    assert jnp.allclose(out2, ref2, atol=1e-4, rtol=1e-4), "f32 tiled path mismatch"

    # --- Test 3: bf16 path with >= 2 grid steps (v7x dual-TensorCore sharding) ---
    x3 = jax.random.normal(k_x3, (1024, state_size), jnp.float32)
    out3 = jax.block_until_ready(qnetwork_forward(x3, prepared_bf16))
    ref3 = qnetwork_reference(x3, params)
    assert out3.shape == (1024, action_size)
    assert jnp.allclose(out3, ref3, atol=1e-1, rtol=5e-2), "bf16 multi-step mismatch"

    print("KERNEL_OK")
</pallas_src>

<mosaic_0001>
module attributes {stable_mosaic.version = 11 : i64} {
  func.func @_qnet_kernel(%arg0: i32, %arg1: memref<8x8xbf16, #tpu.memory_space<vmem>>, %arg2: memref<8x128xbf16, #tpu.memory_space<vmem>>, %arg3: memref<1x128xf32, #tpu.memory_space<vmem>>, %arg4: memref<128x128xbf16, #tpu.memory_space<vmem>>, %arg5: memref<1x128xf32, #tpu.memory_space<vmem>>, %arg6: memref<128x4xbf16, #tpu.memory_space<vmem>>, %arg7: memref<1x4xf32, #tpu.memory_space<vmem>>, %arg8: memref<8x4xf32, #tpu.memory_space<vmem>>) attributes {dimension_semantics = [#tpu.dimension_semantics<parallel>], iteration_bounds = array<i64: 1>, scalar_prefetch = 0 : i64, scratch_operands = 0 : i64, tpu.core_type = #tpu.core_type<tc>, window_params = [{transform_indices = @transform_0, window_bounds = array<i64: 8, 8>}, {pipeline_mode = #tpu.pipeline_mode<synchronous>, transform_indices = @transform_1, window_bounds = array<i64: 8, 128>}, {pipeline_mode = #tpu.pipeline_mode<synchronous>, transform_indices = @transform_2, window_bounds = array<i64: 1, 128>}, {pipeline_mode = #tpu.pipeline_mode<synchronous>, transform_indices = @transform_3, window_bounds = array<i64: 128, 128>}, {pipeline_mode = #tpu.pipeline_mode<synchronous>, transform_indices = @transform_4, window_bounds = array<i64: 1, 128>}, {pipeline_mode = #tpu.pipeline_mode<synchronous>, transform_indices = @transform_5, window_bounds = array<i64: 128, 4>}, {pipeline_mode = #tpu.pipeline_mode<synchronous>, transform_indices = @transform_6, window_bounds = array<i64: 1, 4>}, {transform_indices = @transform_7, window_bounds = array<i64: 8, 4>}]} {
    %c0 = arith.constant 0 : index
    %c0_0 = arith.constant 0 : index
    %0 = vector.load %arg1[%c0, %c0_0] : memref<8x8xbf16, #tpu.memory_space<vmem>>, vector<8x8xbf16>
    %1 = arith.extf %0 : vector<8x8xbf16> to vector<8x8xf32>
    %c0_1 = arith.constant 0 : index
    %c0_2 = arith.constant 0 : index
    %2 = vector.load %arg2[%c0_1, %c0_2] : memref<8x128xbf16, #tpu.memory_space<vmem>>, vector<8x128xbf16>
    %3 = arith.extf %2 : vector<8x128xbf16> to vector<8x128xf32>
    %4 = vector.extract_strided_slice %1 {offsets = [0, 0], sizes = [8, 1], strides = [1, 1]} : vector<8x8xf32> to vector<8x1xf32>
    %5 = vector.extract_strided_slice %3 {offsets = [0, 0], sizes = [1, 128], strides = [1, 1]} : vector<8x128xf32> to vector<1x128xf32>
    %6 = vector.broadcast %4 : vector<8x1xf32> to vector<8x128xf32>
    %7 = vector.broadcast %5 : vector<1x128xf32> to vector<8x128xf32>
    %8 = arith.mulf %6, %7 : vector<8x128xf32>
    %9 = vector.extract_strided_slice %1 {offsets = [0, 1], sizes = [8, 1], strides = [1, 1]} : vector<8x8xf32> to vector<8x1xf32>
    %10 = vector.extract_strided_slice %3 {offsets = [1, 0], sizes = [1, 128], strides = [1, 1]} : vector<8x128xf32> to vector<1x128xf32>
    %11 = vector.broadcast %9 : vector<8x1xf32> to vector<8x128xf32>
    %12 = vector.broadcast %10 : vector<1x128xf32> to vector<8x128xf32>
    %13 = arith.mulf %11, %12 : vector<8x128xf32>
    %14 = arith.addf %8, %13 : vector<8x128xf32>
    %15 = vector.extract_strided_slice %1 {offsets = [0, 2], sizes = [8, 1], strides = [1, 1]} : vector<8x8xf32> to vector<8x1xf32>
    %16 = vector.extract_strided_slice %3 {offsets = [2, 0], sizes = [1, 128], strides = [1, 1]} : vector<8x128xf32> to vector<1x128xf32>
    %17 = vector.broadcast %15 : vector<8x1xf32> to vector<8x128xf32>
    %18 = vector.broadcast %16 : vector<1x128xf32> to vector<8x128xf32>
    %19 = arith.mulf %17, %18 : vector<8x128xf32>
    %20 = arith.addf %14, %19 : vector<8x128xf32>
    %21 = vector.extract_strided_slice %1 {offsets = [0, 3], sizes = [8, 1], strides = [1, 1]} : vector<8x8xf32> to vector<8x1xf32>
    %22 = vector.extract_strided_slice %3 {offsets = [3, 0], sizes = [1, 128], strides = [1, 1]} : vector<8x128xf32> to vector<1x128xf32>
    %23 = vector.broadcast %21 : vector<8x1xf32> to vector<8x128xf32>
    %24 = vector.broadcast %22 : vector<1x128xf32> to vector<8x128xf32>
    %25 = arith.mulf %23, %24 : vector<8x128xf32>
    %26 = arith.addf %20, %25 : vector<8x128xf32>
    %27 = vector.extract_strided_slice %1 {offsets = [0, 4], sizes = [8, 1], strides = [1, 1]} : vector<8x8xf32> to vector<8x1xf32>
    %28 = vector.extract_strided_slice %3 {offsets = [4, 0], sizes = [1, 128], strides = [1, 1]} : vector<8x128xf32> to vector<1x128xf32>
    %29 = vector.broadcast %27 : vector<8x1xf32> to vector<8x128xf32>
    %30 = vector.broadcast %28 : vector<1x128xf32> to vector<8x128xf32>
    %31 = arith.mulf %29, %30 : vector<8x128xf32>
    %32 = arith.addf %26, %31 : vector<8x128xf32>
    %33 = vector.extract_strided_slice %1 {offsets = [0, 5], sizes = [8, 1], strides = [1, 1]} : vector<8x8xf32> to vector<8x1xf32>
    %34 = vector.extract_strided_slice %3 {offsets = [5, 0], sizes = [1, 128], strides = [1, 1]} : vector<8x128xf32> to vector<1x128xf32>
    %35 = vector.broadcast %33 : vector<8x1xf32> to vector<8x128xf32>
    %36 = vector.broadcast %34 : vector<1x128xf32> to vector<8x128xf32>
    %37 = arith.mulf %35, %36 : vector<8x128xf32>
    %38 = arith.addf %32, %37 : vector<8x128xf32>
    %39 = vector.extract_strided_slice %1 {offsets = [0, 6], sizes = [8, 1], strides = [1, 1]} : vector<8x8xf32> to vector<8x1xf32>
    %40 = vector.extract_strided_slice %3 {offsets = [6, 0], sizes = [1, 128], strides = [1, 1]} : vector<8x128xf32> to vector<1x128xf32>
    %41 = vector.broadcast %39 : vector<8x1xf32> to vector<8x128xf32>
    %42 = vector.broadcast %40 : vector<1x128xf32> to vector<8x128xf32>
    %43 = arith.mulf %41, %42 : vector<8x128xf32>
    %44 = arith.addf %38, %43 : vector<8x128xf32>
    %45 = vector.extract_strided_slice %1 {offsets = [0, 7], sizes = [8, 1], strides = [1, 1]} : vector<8x8xf32> to vector<8x1xf32>
    %46 = vector.extract_strided_slice %3 {offsets = [7, 0], sizes = [1, 128], strides = [1, 1]} : vector<8x128xf32> to vector<1x128xf32>
    %47 = vector.broadcast %45 : vector<8x1xf32> to vector<8x128xf32>
    %48 = vector.broadcast %46 : vector<1x128xf32> to vector<8x128xf32>
    %49 = arith.mulf %47, %48 : vector<8x128xf32>
    %50 = arith.addf %44, %49 : vector<8x128xf32>
    %c0_3 = arith.constant 0 : index
    %c0_4 = arith.constant 0 : index
    %51 = vector.load %arg3[%c0_3, %c0_4] : memref<1x128xf32, #tpu.memory_space<vmem>>, vector<1x128xf32>
    %52 = vector.broadcast %51 : vector<1x128xf32> to vector<8x128xf32>
    %53 = arith.addf %50, %52 : vector<8x128xf32>
    %cst = arith.constant 0.000000e+00 : f32
    %54 = vector.broadcast %cst : f32 to vector<8x128xf32>
    %55 = arith.maximumf %53, %54 : vector<8x128xf32>
    %56 = arith.truncf %55 : vector<8x128xf32> to vector<8x128xbf16>
    %c0_5 = arith.constant 0 : index
    %c0_6 = arith.constant 0 : index
    %57 = vector.load %arg4[%c0_5, %c0_6] : memref<128x128xbf16, #tpu.memory_space<vmem>>, vector<128x128xbf16>
    %cst_7 = arith.constant dense<0.000000e+00> : vector<8x128xf32>
    %58 = tpu.matmul %56, %57, %cst_7 {dimension_numbers = #tpu.dot_dimension_numbers<[1], [0], [0], [1], [0, 0, 1, 1], [], []>} : vector<8x128xbf16>, vector<128x128xbf16>, vector<8x128xf32> -> vector<8x128xf32>
    %c0_8 = arith.constant 0 : index
    %c0_9 = arith.constant 0 : index
    %59 = vector.load %arg5[%c0_8, %c0_9] : memref<1x128xf32, #tpu.memory_space<vmem>>, vector<1x128xf32>
    %60 = vector.broadcast %59 : vector<1x128xf32> to vector<8x128xf32>
    %61 = arith.addf %58, %60 : vector<8x128xf32>
    %cst_10 = arith.constant 0.000000e+00 : f32
    %62 = vector.broadcast %cst_10 : f32 to vector<8x128xf32>
    %63 = arith.maximumf %61, %62 : vector<8x128xf32>
    %64 = arith.truncf %63 : vector<8x128xf32> to vector<8x128xbf16>
    %c0_11 = arith.constant 0 : index
    %c0_12 = arith.constant 0 : index
    %65 = vector.load %arg6[%c0_11, %c0_12] : memref<128x4xbf16, #tpu.memory_space<vmem>>, vector<128x4xbf16>
    %cst_13 = arith.constant dense<0.000000e+00> : vector<8x4xf32>
    %66 = tpu.matmul %64, %65, %cst_13 {dimension_numbers = #tpu.dot_dimension_numbers<[1], [0], [0], [1], [0, 0, 1, 1], [], []>} : vector<8x128xbf16>, vector<128x4xbf16>, vector<8x4xf32> -> vector<8x4xf32>
    %c0_14 = arith.constant 0 : index
    %c0_15 = arith.constant 0 : index
    %67 = vector.load %arg7[%c0_14, %c0_15] : memref<1x4xf32, #tpu.memory_space<vmem>>, vector<1x4xf32>
    %68 = vector.broadcast %67 : vector<1x4xf32> to vector<8x4xf32>
    %69 = arith.addf %66, %68 : vector<8x4xf32>
    %c0_16 = arith.constant 0 : index
    %c0_17 = arith.constant 0 : index
    %70 = vector.load %arg8[%c0_16, %c0_17] : memref<8x4xf32, #tpu.memory_space<vmem>>, vector<8x4xf32>
    tpu.vector_store %arg8[%c0_16, %c0_17], %69 {strides = array<i32>} : memref<8x4xf32, #tpu.memory_space<vmem>>, vector<8x4xf32>,
    return
  }
  func.func @transform_0(%arg0: i32) -> (i32, i32) {
    %c0_i32 = arith.constant 0 : i32
    %c0_i32_0 = arith.constant 0 : i32
    return %arg0, %c0_i32 : i32, i32
  }
  func.func @transform_1(%arg0: i32) -> (i32, i32) {
    %c0_i32 = arith.constant 0 : i32
    %c0_i32_0 = arith.constant 0 : i32
    %c0_i32_1 = arith.constant 0 : i32
    return %c0_i32, %c0_i32_0 : i32, i32
  }
  func.func @transform_2(%arg0: i32) -> (i32, i32) {
    %c0_i32 = arith.constant 0 : i32
    %c0_i32_0 = arith.constant 0 : i32
    %c0_i32_1 = arith.constant 0 : i32
    return %c0_i32, %c0_i32_0 : i32, i32
  }
  func.func @transform_3(%arg0: i32) -> (i32, i32) {
    %c0_i32 = arith.constant 0 : i32
    %c0_i32_0 = arith.constant 0 : i32
    %c0_i32_1 = arith.constant 0 : i32
    return %c0_i32, %c0_i32_0 : i32, i32
  }
  func.func @transform_4(%arg0: i32) -> (i32, i32) {
    %c0_i32 = arith.constant 0 : i32
    %c0_i32_0 = arith.constant 0 : i32
    %c0_i32_1 = arith.constant 0 : i32
    return %c0_i32, %c0_i32_0 : i32, i32
  }
  func.func @transform_5(%arg0: i32) -> (i32, i32) {
    %c0_i32 = arith.constant 0 : i32
    %c0_i32_0 = arith.constant 0 : i32
    %c0_i32_1 = arith.constant 0 : i32
    return %c0_i32, %c0_i32_0 : i32, i32
  }
  func.func @transform_6(%arg0: i32) -> (i32, i32) {
    %c0_i32 = arith.constant 0 : i32
    %c0_i32_0 = arith.constant 0 : i32
    %c0_i32_1 = arith.constant 0 : i32
    return %c0_i32, %c0_i32_0 : i32, i32
  }
  func.func @transform_7(%arg0: i32) -> (i32, i32) {
    %c0_i32 = arith.constant 0 : i32
    %c0_i32_0 = arith.constant 0 : i32
    return %arg0, %c0_i32 : i32, i32
  }
}

</mosaic_0001>

<bundles_post_ra>
// kernel: qnetwork_forward.1
= control target key start
LH: loop header
LB: loop body
LE: loop exit
PB: predicated region body
PF: predicated region fallthrough
CT: control target
= control target key end

     0   :  { %v363_v0 = vmov 0   ;;  %v364_v1 = vmov 2   ;;  %v365_v4 = vmov 4   ;;  %v366_v5 = vmov 1   ;;  %s477_s0 = inlined_call_operand.vmem [shape: bf16[8,8], index: 0, kind: input, shape index: {}]   ;;  %s478_s2 = inlined_call_operand.vmem [shape: f32[1,128], index: 2, kind: input, shape index: {}]   ;;  %s479_s4 = inlined_call_operand.vmem [shape: f32[1,128], index: 4, kind: input, shape index: {}]   ;;  %s480_s3 = inlined_call_operand.vmem [shape: bf16[128,128], index: 3, kind: input, shape index: {}]   ;;  %s481_s1 = inlined_call_operand.vmem [shape: bf16[8,128], index: 1, kind: input, shape index: {}]   ;;  %s482_s5 = inlined_call_operand.vmem [shape: bf16[128,4], index: 5, kind: input, shape index: {}]   ;;  %s483_s6 = inlined_call_operand.vmem [shape: f32[1,4], index: 6, kind: input, shape index: {}]   ;;  %s484_s7 = inlined_call_operand.vmem [shape: f32[8,4], index: 7, kind: output, shape index: {}]  }
   0x1   :  { %351 = vset.pattern.permute.xlu0 %v363_v0  ;;  %353 = vset.pattern.permute.xlu1 %v364_v1  ;;  %v26_v2 = vld [vmem:[%s477_s0] sm:$0xf]  ;;  %v367_v6 = vmov 3   ;;  %v368_v7 = vmov 5   ;;  %v369_v8 = vmov 6   ;;  %v370_v9 = vmov 7  }
   0x2   :  { %v27_v3 = vunpack.c.l.bf16 %v26_v2  ;;  %355 = vset.pattern.permute.xlu2 %v365_v4  ;;  %v334_v10 = vld [vmem:[%s480_s3 + $0x38] sm:$0xff]  ;;  %v333_v11 = vld [vmem:[%s480_s3 + $0x30] sm:$0xff]  ;;  %v332_v12 = vld [vmem:[%s480_s3 + $0x28] sm:$0xff]  ;;  %vm257_vm0 = vcmask 31744  }
   0x3   :  { %161 = vmatpush.bf16.msra.mxu0 %v334_v10  ;;  %v331_v13 = vld [vmem:[%s480_s3 + $0x20] sm:$0xff]  ;;  %v330_v14 = vld [vmem:[%s480_s3 + $0x18] sm:$0xff]  ;;  %v329_v15 = vld [vmem:[%s480_s3 + $0x10] sm:$0xff] }
   0x4   :  { %32 = vperm.xlu0 %351, %v27_v3   ;;  %45 = vperm.xlu1 %353, %v27_v3   ;;  %v328_v16 = vld [vmem:[%s480_s3 + $0x8] sm:$0xff]  ;;  %v327_v17 = vld [vmem:[%s480_s3] sm:$0xff]  ;;  %v342_v22 = vld [vmem:[%s482_s5 + $0x38] sm:$0xff] }
   0x5   :  { %59 = vperm.xlu2 %355, %v27_v3   ;;  %v28_v19 = vld [vmem:[%s481_s1] sm:$0xf]  ;;  %244 = vmatpush.bf16.msra.mxu1 %v342_v22  ;;  %v341_v24 = vld [vmem:[%s482_s5 + $0x30] sm:$0xff]  ;;  %v340_v27 = vld [vmem:[%s482_s5 + $0x28] sm:$0xff] }
   0x6   :  { %v29_v23 = vunpack.c.l.bf16 %v28_v19  ;;  %v339_v35 = vld [vmem:[%s482_s5 + $0x20] sm:$0xff]  ;;  %v338_v42 = vld [vmem:[%s482_s5 + $0x18] sm:$0xff]  ;;  %v337_v51 = vld [vmem:[%s482_s5 + $0x10] sm:$0xff] }
   0x7   :  { %162 = vmatpush.bf16.msra.mxu0 %v333_v11  ;;  %v360_v56 = vld [vmem:[%s478_s2] ss:$0 sm:$0xff]  ;;  %v336_v61 = vld [vmem:[%s482_s5 + $0x8] sm:$0xff] }
   0x8   :  { %v35_v25 = vperm.slane %v29_v23, 0  ;;  %v41_v26 = vperm.slane %v29_v23, 1  ;;  %v48_v29 = vperm.slane %v29_v23, 2  ;;  %v55_v34 = vperm.slane %v29_v23, 3  ;;  %v335_v62 = vld [vmem:[%s482_s5] sm:$0xff] }
   0x9   :  { %245 = vmatpush.bf16.msra.mxu1 %v341_v24  ;;  %v62_v37 = vperm.slane %v29_v23, 4  ;;  %v69_v41 = vperm.slane %v29_v23, 5  ;;  %v76_v43 = vperm.slane %v29_v23, 6  ;;  %v83_v46 = vperm.slane %v29_v23, 7  ;;  %v361_v63 = vld [vmem:[%s479_s4] ss:$0 sm:$0xff] }
   0xb   :  { %163 = vmatpush.bf16.msra.mxu0 %v332_v12 }
   0xc   :  { %352 = vset.pattern.permute.xlu0 %v366_v5  ;;  %354 = vset.pattern.permute.xlu1 %v367_v6  ;;  %v362_v5 = vld [vmem:[%s483_s6] ss:$0 sm:$0xff] }
   0xd   :  { %38 = vperm.xlu0 %352, %v27_v3   ;;  %52 = vperm.xlu1 %354, %v27_v3  }
   0xe   :  { %356 = vset.pattern.permute.xlu2 %v368_v7  ;;  %246 = vmatpush.bf16.msra.mxu1 %v340_v27 }
   0xf   :  { %66 = vperm.xlu2 %356, %v27_v3   ;;  %164 = vmatpush.bf16.msra.mxu0 %v331_v13 }
  0x12   :  { %247 = vmatpush.bf16.msra.mxu1 %v339_v35 }
  0x13   :  { %165 = vmatpush.bf16.msra.mxu0 %v330_v14 }
  0x15   :  { %357 = vset.pattern.permute.xlu1 %v369_v8  ;;  %359 = vset.pattern.permute.xlu0 %v370_v9 }
  0x16   :  { %73 = vperm.xlu1 %357, %v27_v3   ;;  %248 = vmatpush.bf16.msra.mxu1 %v338_v42 }
  0x17   :  { %358 = vset.pattern.permute.xlu2 %v370_v9  ;;  %166 = vmatpush.bf16.msra.mxu0 %v329_v15 }
  0x18   :  { %80 = vperm.xlu2 %358, %v27_v3  }
  0x1a   :  { %249 = vmatpush.bf16.msra.mxu1 %v337_v51 }
  0x1b   :  { %167 = vmatpush.bf16.msra.mxu0 %v328_v16 }
  0x1e   :  { %250 = vmatpush.bf16.msra.mxu1 %v336_v61 }
  0x1f   :  { %168 = vmatpush.bf16.msra.mxu0 %v327_v17 }
  0x22   :  { %251 = vmatpush.bf16.msra.mxu1 %v335_v62 }
  0x5f   :  { %v60_v18 = vpop.permute.xlu2 %59 }
  0x60   :  { %v63_v44 = vmul.f32 %v62_v37, %v60_v18 }
  0x69   :  { %v67_v28 = vpop.permute.xlu2 %66 }
  0x6a   :  { %v70_v49 = vmul.f32 %v69_v41, %v67_v28 }
  0x72   :  { %v81_v47 = vpop.permute.xlu2 %80 }
  0x73   :  { %v84_v54 = vmul.f32 %v83_v46, %v81_v47 }
  0x76   :  { %v33_v20 = vpop.permute.xlu0 %32  ;;  %v46_v21 = vpop.permute.xlu1 %45 }
  0x77   :  { %v36_v32 = vmul.f32 %v35_v25, %v33_v20  ;;  %v49_v36 = vmul.f32 %v48_v29, %v46_v21 }
  0x7f   :  { %v39_v30 = vpop.permute.xlu0 %38  ;;  %v53_v31 = vpop.permute.xlu1 %52 }
  0x80   :  { %v42_v33 = vmul.f32 %v41_v26, %v39_v30  ;;  %v56_v40 = vmul.f32 %v55_v34, %v53_v31 }
  0x82   :  { %v43_v38 = vadd.f32 %v42_v33, %v36_v32 }
  0x84   :  { %v50_v39 = vadd.f32 %v49_v36, %v43_v38 }
  0x86   :  { %v57_v45 = vadd.f32 %v56_v40, %v50_v39 }
  0x88   :  { %v64_v48 = vadd.f32 %v63_v44, %v57_v45  ;;  %v74_v50 = vpop.permute.xlu1 %73 }
  0x89   :  { %v77_v52 = vmul.f32 %v76_v43, %v74_v50 }
  0x8a   :  { %v71_v53 = vadd.f32 %v70_v49, %v64_v48 }
  0x8c   :  { %v78_v55 = vadd.f32 %v77_v52, %v71_v53 }
  0x8e   :  { %v85_v57 = vadd.f32 %v84_v54, %v78_v55 }
  0x90   :  { %v90_v58 = vadd.f32 %v360_v56, %v85_v57 }
  0x92   :  { %v91_v59 = vmax.f32 %v90_v58, 0.0 }
  0x94   :  { %v92_v60 = vpack.c.bf16 %v91_v59, %v91_v59 }
  0x96   :  { %169 = vmatmul.bf16.vlgmr.msra.gmra.mxu0 %v92_v60 }
 0x113   :  { %v170_v0 = vpop.f32.mrf.mxu0 }
 0x114   :  { %v171_v1 = vadd.f32 %v361_v63, %v170_v0 }
 0x116   :  { %v174_v2 = vmax.f32 %v171_v1, 0.0 }
 0x118   :  { %v175_v3 = vpack.c.bf16 %v174_v2, %v174_v2 }
 0x11a   :  { %252 = vmatmul.bf16.vlgmr.msra.gmra.mxu1 %v175_v3 }
 0x11b   :  { %v172_v4 = vpop.f32.mrf.mxu0 }
 0x197   :  { %v253_v6 = vpop.f32.mrf.mxu1 }
 0x198   :  { %v254_v7 = vadd.f32 %v362_v5, %v253_v6 }
 0x19a   :  { %258 = vst.msk [vmem:[%s484_s7] sm:$0xff] %vm257_vm0, %v254_v7 }
 0x19f   :  { %v255_v8 = vpop.f32.mrf.mxu1 }

</bundles_post_ra>
